<compile_context>
chip_gen: v7x
topology: tpu7x:2x2x1
jax: 0.10.0
libtpu: 0.0.40
codegen_flags: <defaults>
</compile_context>

<pallas_src>
import functools
import math

import jax
import jax.numpy as jnp
from jax.experimental import pallas as pl
from jax.experimental.pallas import tpu as pltpu


def _round_up(n, m):
    return ((n + m - 1) // m) * m


def _pick_tile(dim, target, align):
    """Largest multiple of `align` that divides `dim` and is <= target.

    If dim itself is <= target, use the full dim. If no aligned divisor
    exists, fall back to the full dim (always a legal block shape).
    """
    if dim <= target:
        return dim
    t = (target // align) * align
    while t >= align:
        if dim % t == 0:
            return t
        t -= align
    return dim


def _vmem_capacity_bytes():
    try:
        cap = int(pltpu.get_tpu_info().vmem_capacity_bytes)
        if cap > 0:
            return cap
    except Exception:
        pass
    # Conservative fallback: v7x per-TensorCore VMEM.
    return 64 << 20


def _lora_kernel(x_ref, b_ref, a_ref, o_ref, *, scaling, tn):
    # lora_A is fully resident in VMEM; slice the (rank, tn) column block here
    # instead of re-DMAing a tiny sublane-padded tile every grid step.
    j = pl.program_id(1)
    start = j * tn
    if tn % 128 == 0:
        start = pl.multiple_of(start, 128)
    a_tile = a_ref[:, pl.ds(start, tn)]

    # delta tile = B_block (tm, r) @ A_tile (r, tn) on the MXU, f32 accumulate.
    delta = jnp.dot(b_ref[...], a_tile, preferred_element_type=jnp.float32)
    # Scale the f32 delta in-kernel: free under the memory-bound regime and
    # numerically matches the reference x + (B @ A) * scaling.
    o_ref[...] = (x_ref[...].astype(jnp.float32) + delta * scaling).astype(
        o_ref.dtype
    )


def lora_parametrization_forward(x, lora_B, lora_A, scaling, *, tm=None, tn=None):
    """x: (fan_out, fan_in), lora_B: (fan_out, rank), lora_A: (rank, fan_in)."""
    fan_out, fan_in = x.shape
    rank, fan_in_a = lora_A.shape
    assert lora_B.shape == (fan_out, rank)
    assert fan_in_a == fan_in

    x_itemsize = jnp.dtype(x.dtype).itemsize
    ba_itemsize = jnp.dtype(lora_A.dtype).itemsize
    # Sublane alignment: 8 for 32-bit, 16 for 16-bit (bf16 sublane packing).
    align_m = 16 if x_itemsize == 2 else 8

    # Big tiles: the kernel is HBM-bound, so per-step overhead dominates unless
    # tiles are large. 512 x 2048 f32 = 4 MiB/tile; double-buffered x + out is
    # ~16 MiB, comfortably inside every generation's VMEM (incl. v7x's 64 MiB).
    if tm is None:
        tm = _pick_tile(fan_out, 512, align_m)
    if tn is None:
        tn = _pick_tile(fan_in, 2048, 128)
    assert fan_out % tm == 0 and fan_in % tn == 0, (fan_out, tm, fan_in, tn)

    grid = (fan_out // tm, fan_in // tn)

    # VMEM budget: double-buffered x tile, out tile, B block; A held once
    # (constant index_map) but count 2x to be safe. Add headroom, cap to a
    # fraction of physical VMEM so v7x (64 MiB) never OOMs.
    x_buf = tm * _round_up(tn, 128) * x_itemsize
    b_buf = _round_up(tm, 8) * _round_up(rank, 128) * ba_itemsize
    a_buf = _round_up(rank, 8) * _round_up(fan_in, 128) * ba_itemsize
    working = 2 * (2 * x_buf + b_buf + a_buf)
    cap = _vmem_capacity_bytes()
    vmem_limit = min(max(working + (8 << 20), 32 << 20), (cap * 3) // 4)

    cost = pl.CostEstimate(
        flops=2 * fan_out * fan_in * rank + fan_out * fan_in,
        transcendentals=0,
        bytes_accessed=(
            2 * fan_out * fan_in * x_itemsize
            + (fan_out * rank + rank * fan_in) * ba_itemsize
        ),
    )

    kernel = functools.partial(_lora_kernel, scaling=float(scaling), tn=tn)

    return pl.pallas_call(
        kernel,
        out_shape=jax.ShapeDtypeStruct((fan_out, fan_in), x.dtype),
        grid_spec=pltpu.PrefetchScalarGridSpec(
            num_scalar_prefetch=0,
            grid=grid,
            in_specs=[
                pl.BlockSpec((tm, tn), lambda i, j: (i, j)),        # x tile
                pl.BlockSpec((tm, rank), lambda i, j: (i, 0)),      # B rows (resident over j)
                pl.BlockSpec((rank, fan_in), lambda i, j: (0, 0)),  # A fully resident
            ],
            out_specs=pl.BlockSpec((tm, tn), lambda i, j: (i, j)),
        ),
        compiler_params=pltpu.CompilerParams(
            dimension_semantics=("parallel", "parallel"),
            vmem_limit_bytes=int(vmem_limit),
        ),
        cost_estimate=cost,
    )(x, lora_B, lora_A)


def _make_inputs(key, fan_out, fan_in, rank, dtype=jnp.float32):
    kx, ka, kb = jax.random.split(key, 3)
    x = jax.random.normal(kx, (fan_out, fan_in)).astype(dtype)
    # kaiming_uniform_(a=sqrt(5)) on lora_A -> U(-1/sqrt(fan_in), 1/sqrt(fan_in))
    bound = 1.0 / math.sqrt(fan_in)
    lora_A = jax.random.uniform(
        ka, (rank, fan_in), minval=-bound, maxval=bound
    ).astype(dtype)
    # NOTE: the PyTorch module initializes lora_B to zeros (forward == identity).
    # Use a small deterministic random lora_B so the kernel path is exercised.
    lora_B = (0.01 * jax.random.normal(kb, (fan_out, rank))).astype(dtype)
    return x, lora_B, lora_A


if __name__ == "__main__":
    key = jax.random.PRNGKey(0)
    k1, k2, k3 = jax.random.split(key, 3)

    # 1) Small shapes consistent with the module (single tile, grid = (1, 1)).
    fan_in, fan_out, rank, lora_alpha = 256, 64, 4, 1
    scaling = lora_alpha / rank
    x, lora_B, lora_A = _make_inputs(k1, fan_out, fan_in, rank)
    out = jax.block_until_ready(
        lora_parametrization_forward(x, lora_B, lora_A, scaling)
    )
    ref = x + (lora_B @ lora_A) * scaling
    assert out.shape == (fan_out, fan_in)
    assert jnp.allclose(out, ref, atol=1e-5, rtol=1e-5)

    # 2) Slightly larger shapes with explicit tiles so the multi-tile path
    #    (in-kernel A slicing at nonzero offsets, grid (2, 2)) is exercised.
    fan_in2, fan_out2 = 1024, 256
    x2, lora_B2, lora_A2 = _make_inputs(k2, fan_out2, fan_in2, rank)
    out2 = jax.block_until_ready(
        lora_parametrization_forward(x2, lora_B2, lora_A2, scaling, tm=128, tn=512)
    )
    ref2 = x2 + (lora_B2 @ lora_A2) * scaling
    assert out2.shape == (fan_out2, fan_in2)
    assert jnp.allclose(out2, ref2, atol=1e-5, rtol=1e-5)

    # 3) bf16 weights (sublane-packed path), single tile.
    x3, lora_B3, lora_A3 = _make_inputs(k3, 64, 256, rank, dtype=jnp.bfloat16)
    out3 = jax.block_until_ready(
        lora_parametrization_forward(x3, lora_B3, lora_A3, scaling)
    )
    ref3 = (
        x3.astype(jnp.float32)
        + (lora_B3.astype(jnp.float32) @ lora_A3.astype(jnp.float32)) * scaling
    ).astype(jnp.bfloat16)
    assert jnp.allclose(
        out3.astype(jnp.float32), ref3.astype(jnp.float32), atol=2e-2, rtol=2e-2
    )

    print("KERNEL_OK")
</pallas_src>

<mosaic_0001>
module attributes {stable_mosaic.version = 11 : i64} {
  func.func @_lora_kernel(%arg0: i32, %arg1: i32, %arg2: memref<64x256xf32, #tpu.memory_space<vmem>>, %arg3: memref<64x4xf32, #tpu.memory_space<vmem>>, %arg4: memref<4x256xf32, #tpu.memory_space<vmem>>, %arg5: memref<64x256xf32, #tpu.memory_space<vmem>>) attributes {dimension_semantics = [#tpu.dimension_semantics<parallel>, #tpu.dimension_semantics<parallel>], iteration_bounds = array<i64: 1, 1>, scalar_prefetch = 0 : i64, scratch_operands = 0 : i64, tpu.core_type = #tpu.core_type<tc>, window_params = [{transform_indices = @transform_0, window_bounds = array<i64: 64, 256>}, {transform_indices = @transform_1, window_bounds = array<i64: 64, 4>}, {pipeline_mode = #tpu.pipeline_mode<synchronous>, transform_indices = @transform_2, window_bounds = array<i64: 4, 256>}, {transform_indices = @transform_3, window_bounds = array<i64: 64, 256>}]} {
    %c256_i32 = arith.constant 256 : i32
    %0 = arith.muli %arg1, %c256_i32 : i32
    %1 = tpu.assume_multiple %0, 128 : i32
    %c0 = arith.constant 0 : index
    %2 = arith.index_cast %1 : i32 to index
    %3 = vector.load %arg4[%c0, %2] : memref<4x256xf32, #tpu.memory_space<vmem>>, vector<4x256xf32>
    %c0_0 = arith.constant 0 : index
    %c0_1 = arith.constant 0 : index
    %4 = vector.load %arg3[%c0_0, %c0_1] : memref<64x4xf32, #tpu.memory_space<vmem>>, vector<64x4xf32>
    %cst = arith.constant dense<0.000000e+00> : vector<64x256xf32>
    %5 = tpu.matmul %4, %3, %cst {dimension_numbers = #tpu.dot_dimension_numbers<[1], [0], [0], [1], [0, 0, 1, 1], [], []>} : vector<64x4xf32>, vector<4x256xf32>, vector<64x256xf32> -> vector<64x256xf32>
    %c0_2 = arith.constant 0 : index
    %c0_3 = arith.constant 0 : index
    %6 = vector.load %arg2[%c0_2, %c0_3] : memref<64x256xf32, #tpu.memory_space<vmem>>, vector<64x256xf32>
    %cst_4 = arith.constant 2.500000e-01 : f32
    %7 = vector.broadcast %cst_4 : f32 to vector<64x256xf32>
    %8 = arith.mulf %5, %7 : vector<64x256xf32>
    %9 = arith.addf %6, %8 : vector<64x256xf32>
    %c0_5 = arith.constant 0 : index
    %c0_6 = arith.constant 0 : index
    %10 = vector.load %arg5[%c0_5, %c0_6] : memref<64x256xf32, #tpu.memory_space<vmem>>, vector<64x256xf32>
    tpu.vector_store %arg5[%c0_5, %c0_6], %9 {strides = array<i32>} : memref<64x256xf32, #tpu.memory_space<vmem>>, vector<64x256xf32>,
    return
  }
  func.func @transform_0(%arg0: i32, %arg1: i32) -> (i32, i32) {
    %c0_i32 = arith.constant 0 : i32
    return %arg0, %arg1 : i32, i32
  }
  func.func @transform_1(%arg0: i32, %arg1: i32) -> (i32, i32) {
    %c0_i32 = arith.constant 0 : i32
    %c0_i32_0 = arith.constant 0 : i32
    return %arg0, %c0_i32 : i32, i32
  }
  func.func @transform_2(%arg0: i32, %arg1: i32) -> (i32, i32) {
    %c0_i32 = arith.constant 0 : i32
    %c0_i32_0 = arith.constant 0 : i32
    %c0_i32_1 = arith.constant 0 : i32
    return %c0_i32, %c0_i32_0 : i32, i32
  }
  func.func @transform_3(%arg0: i32, %arg1: i32) -> (i32, i32) {
    %c0_i32 = arith.constant 0 : i32
    return %arg0, %arg1 : i32, i32
  }
}

</mosaic_0001>

<bundles_post_ra>
// kernel: tpu_custom_call.1
= control target key start
LH: loop header
LB: loop body
LE: loop exit
PB: predicated region body
PF: predicated region fallthrough
CT: control target
= control target key end

     0   :  { %8 = vsyncpa [#allocation3], 0  ;;  %s427_s0 = inlined_call_operand.hbm [shape: f32[64,256], index: 0, kind: input, shape index: {}]   ;;  %s428_s1 = inlined_call_operand.vmem [shape: f32[64,4], index: 1, kind: input, shape index: {}]   ;;  %s429_s2 = inlined_call_operand.vmem [shape: f32[4,256], index: 2, kind: input, shape index: {}]   ;;  %s430_s3 = inlined_call_operand.hbm [shape: f32[64,256], index: 3, kind: output, shape index: {}]  }
   0x1   :  { %9 = vsyncpa [#allocation4], 0  ;;  %s337_s12 = smov [#allocation2]   ;;  %s289_s16 = scalar_lea.hbm %s427_s0, 2048 }
   0x2   :  { %s15_s13 = sshll.u32 %s337_s12, 4  ;;  %p290_p0 = scmp.ne.s32.totalorder %s427_s0, %s289_s16  ;;  %s16_s13 = int_to_ptr.vmem [resolvable:$true] %s15_s13 }
   0x3   :  { %p293_p1 = scmp.lt.u32.totalorder %s289_s16, %s427_s0 }
   0x5   :  { %p295_p2 = pnand %p293_p1, %p290_p0 }
   0x7   :  { %298 = shalt.err (!%p295_p2)
}
   0x8   :  { %s299_s21 = scalar_lea.vmem %s16_s13, 2048  ;;  %p304_p4 = scmp.lt.s32.totalorder %s16_s13, %s16_s13 }
   0x9   :  { %p300_p3 = scmp.ne.s32.totalorder %s16_s13, %s299_s21  ;;  %p305_p5 = scmp.lt.s32.totalorder %s299_s21, %s299_s21 }
   0xb   :  { %p306_p6 = por %p305_p5, %p304_p4 }
   0xd   :  { %p307_p7 = pnand %p306_p6, %p300_p3 }
   0xf   :  { %310 = shalt.err (!%p307_p7)
}
  0x10   :  { %s338_s22 = smov 256   ;;  %s339_s23 = smov 16  }
  0x11   :  { %21 = dma.hbm_to_vmem [thread:$0]  %s427_s0, 2048, %s16_s13, [#allocation3], %s338_s22, %s338_s22, %s339_s23  }
  0x12   :  { %333 = dma.done.wait [#allocation3], 2048  }
  0x13   :  { %334 = vsyncadd [#allocation3], 4294965248  ;;  %v340_v0 = vmov 0.0   ;;  %v34_v1 = vld [vmem:[%s429_s2] sm:$0xff]  ;;  %vm70_vm0 = vcmask 1043456   ;;  %vm45_vm1 = vcmask 31744  }
  0x14   :  { %139 = vmatprep.mubr.f32.mxu0 %v340_v0  ;;  %163 = vmatprep.mubr.f32.mxu1 %v340_v0  ;;  %v44_v2 = vcombine.high %v34_v1, %v34_v1  ;;  %v35_v3 = vld [vmem:[%s428_s1] sm:$0xff]  ;;  %v36_v5 = vld [vmem:[%s428_s1 + $0x8] sm:$0xff]  ;;  %v37_v7 = vld [vmem:[%s428_s1 + $0x10] sm:$0xff] }
  0x15   :  { %v39_v4 = vld [vmem:[%s428_s1 + $0x20] sm:$0xff]  ;;  %v40_v6 = vld [vmem:[%s428_s1 + $0x28] sm:$0xff]  ;;  %v41_v8 = vld [vmem:[%s428_s1 + $0x30] sm:$0xff] }
  0x16   :  { %271 = vmatprep.subr.msk.mxu0 %vm70_vm0, %v44_v2  ;;  %281 = vmatprep.subr.msk.mxu1 %vm70_vm0, %v44_v2  ;;  %v38_v9 = vld [vmem:[%s428_s1 + $0x18] sm:$0xff]  ;;  %v188_v12 = vld [vmem:[#allocation2] sm:$0xff]  ;;  %v189_v18 = vld [vmem:[#allocation2 + $0x8] sm:$0xff] }
  0x17   :  { %272 = vmatpush1.msk.msra.mxu0 %vm70_vm0, %v34_v1  ;;  %282 = vmatpush1.msk.msra.mxu1 %vm70_vm0, %v34_v1  ;;  %v42_v10 = vld [vmem:[%s428_s1 + $0x38] sm:$0xff]  ;;  %v196_v14 = vld [vmem:[#allocation2 + $0x40] sm:$0xff]  ;;  %v197_v20 = vld [vmem:[#allocation2 + $0x48] sm:$0xff]  ;;  %s341_s1 = smov [#allocation5]  }
  0x18   :  { %273 = vmatmul.mubr.msk.f32.vlgmr.msra.gmra.mrb[0].mxu0 %vm45_vm1, %v35_v3  ;;  %277 = vmatmul.mubr.msk.f32.vlgmr.msra.gmra.mrb[0].mxu1 %vm45_vm1, %v39_v4  ;;  %v190_v28 = vld [vmem:[#allocation2 + $0x10] sm:$0xff]  ;;  %v191_v34 = vld [vmem:[#allocation2 + $0x18] sm:$0xff]  ;;  %v192_v44 = vld [vmem:[#allocation2 + $0x20] sm:$0xff]  ;;  %s257_s15 = sshll.u32 %s341_s1, 4  ;;  %s258_s15 = int_to_ptr.vmem [resolvable:$true] %s257_s15 }
  0x19   :  { %145 = vmatprep.mubr.f32.mxu0 %v340_v0  ;;  %169 = vmatprep.mubr.f32.mxu1 %v340_v0  ;;  %v198_v30 = vld [vmem:[#allocation2 + $0x50] sm:$0xff]  ;;  %v199_v36 = vld [vmem:[#allocation2 + $0x58] sm:$0xff]  ;;  %v200_v46 = vld [vmem:[#allocation2 + $0x60] sm:$0xff]  ;;  %s311_s16 = scalar_lea.vmem %s258_s15, 2048  ;;  %p316_p9 = scmp.lt.s32.totalorder %s258_s15, %s258_s15 }
  0x1a   :  { %v193_v50 = vld [vmem:[#allocation2 + $0x28] sm:$0xff]  ;;  %v194_v60 = vld [vmem:[#allocation2 + $0x30] sm:$0xff]  ;;  %v195_v63 = vld [vmem:[#allocation2 + $0x38] sm:$0xff]  ;;  %p312_p8 = scmp.ne.s32.totalorder %s258_s15, %s311_s16  ;;  %p317_p10 = scmp.lt.s32.totalorder %s311_s16, %s311_s16 }
  0x1b   :  { %v201_v52 = vld [vmem:[#allocation2 + $0x68] sm:$0xff]  ;;  %v202_v62 = vld [vmem:[#allocation2 + $0x70] sm:$0xff]  ;;  %v203_v4 = vld [vmem:[#allocation2 + $0x78] sm:$0xff] }
  0x1c   :  { %274 = vmatmul.mubr.msk.f32.gmra.mrb[2].mxu0 %vm45_vm1, %v36_v5  ;;  %278 = vmatmul.mubr.msk.f32.gmra.mrb[2].mxu1 %vm45_vm1, %v40_v6  ;;  %p318_p11 = por %p317_p10, %p316_p9 }
  0x1d   :  { %151 = vmatprep.mubr.f32.mxu0 %v340_v0  ;;  %175 = vmatprep.mubr.f32.mxu1 %v340_v0 }
  0x1e   :  { %p319_p12 = pnand %p318_p11, %p312_p8 }
  0x20   :  { %275 = vmatmul.mubr.msk.f32.gmra.mrb[4].mxu0 %vm45_vm1, %v37_v7  ;;  %279 = vmatmul.mubr.msk.f32.gmra.mrb[4].mxu1 %vm45_vm1, %v41_v8 }
  0x21   :  { %157 = vmatprep.mubr.f32.mxu0 %v340_v0  ;;  %181 = vmatprep.mubr.f32.mxu1 %v340_v0 }
  0x24   :  { %276 = vmatmul.mubr.msk.f32.gmra.mrb[6].mxu0 %vm45_vm1, %v38_v9  ;;  %280 = vmatmul.mubr.msk.f32.gmra.mrb[6].mxu1 %vm45_vm1, %v42_v10 }
  0xeb   :  { %v141_v11 = vpop.f32.mrb[0].mxu0  ;;  %v165_v13 = vpop.f32.mrb[0].mxu1 }
  0xec   :  { %v204_v15 = vmul.f32 0.25, %v141_v11  ;;  %v212_v16 = vmul.f32 0.25, %v165_v13  ;;  %v143_v17 = vpop.f32.mrb[1].mxu0  ;;  %v167_v19 = vpop.f32.mrb[1].mxu1 }
  0xed   :  { %v205_v21 = vmul.f32 0.25, %v143_v17  ;;  %v213_v22 = vmul.f32 0.25, %v167_v19 }
  0xee   :  { %v220_v23 = vadd.f32 %v204_v15, %v188_v12  ;;  %v228_v24 = vadd.f32 %v212_v16, %v196_v14 }
  0xef   :  { %v221_v25 = vadd.f32 %v205_v21, %v189_v18  ;;  %v229_v26 = vadd.f32 %v213_v22, %v197_v20  ;;  %v147_v27 = vpop.f32.mrb[2].mxu0  ;;  %v171_v29 = vpop.f32.mrb[2].mxu1 }
  0xf0   :  { %236 = vst [vmem:[#allocation5] sm:$0xff] %v220_v23  ;;  %244 = vst [vmem:[#allocation5 + $0x40] sm:$0xff] %v228_v24  ;;  %v206_v31 = vmul.f32 0.25, %v147_v27  ;;  %v214_v32 = vmul.f32 0.25, %v171_v29  ;;  %v149_v33 = vpop.f32.mrb[3].mxu0  ;;  %v173_v35 = vpop.f32.mrb[3].mxu1 }
  0xf1   :  { %237 = vst [vmem:[#allocation5 + $0x8] sm:$0xff] %v221_v25  ;;  %245 = vst [vmem:[#allocation5 + $0x48] sm:$0xff] %v229_v26  ;;  %v207_v37 = vmul.f32 0.25, %v149_v33  ;;  %v215_v38 = vmul.f32 0.25, %v173_v35 }
  0xf2   :  { %v222_v39 = vadd.f32 %v206_v31, %v190_v28  ;;  %v230_v40 = vadd.f32 %v214_v32, %v198_v30 }
  0xf3   :  { %v223_v41 = vadd.f32 %v207_v37, %v191_v34  ;;  %v231_v42 = vadd.f32 %v215_v38, %v199_v36  ;;  %v153_v43 = vpop.f32.mrb[4].mxu0  ;;  %v177_v45 = vpop.f32.mrb[4].mxu1 }
  0xf4   :  { %238 = vst [vmem:[#allocation5 + $0x10] sm:$0xff] %v222_v39  ;;  %246 = vst [vmem:[#allocation5 + $0x50] sm:$0xff] %v230_v40  ;;  %v208_v47 = vmul.f32 0.25, %v153_v43  ;;  %v216_v48 = vmul.f32 0.25, %v177_v45  ;;  %v155_v49 = vpop.f32.mrb[5].mxu0  ;;  %v179_v51 = vpop.f32.mrb[5].mxu1 }
  0xf5   :  { %239 = vst [vmem:[#allocation5 + $0x18] sm:$0xff] %v223_v41  ;;  %247 = vst [vmem:[#allocation5 + $0x58] sm:$0xff] %v231_v42  ;;  %v209_v53 = vmul.f32 0.25, %v155_v49  ;;  %v217_v54 = vmul.f32 0.25, %v179_v51 }
  0xf6   :  { %v224_v55 = vadd.f32 %v208_v47, %v192_v44  ;;  %v232_v56 = vadd.f32 %v216_v48, %v200_v46 }
  0xf7   :  { %v225_v57 = vadd.f32 %v209_v53, %v193_v50  ;;  %v233_v58 = vadd.f32 %v217_v54, %v201_v52  ;;  %v159_v59 = vpop.f32.mrb[6].mxu0  ;;  %v183_v61 = vpop.f32.mrb[6].mxu1 }
  0xf8   :  { %240 = vst [vmem:[#allocation5 + $0x20] sm:$0xff] %v224_v55  ;;  %248 = vst [vmem:[#allocation5 + $0x60] sm:$0xff] %v232_v56  ;;  %v210_v0 = vmul.f32 0.25, %v159_v59  ;;  %v218_v1 = vmul.f32 0.25, %v183_v61  ;;  %v161_v2 = vpop.f32.mrb[7].mxu0  ;;  %v185_v3 = vpop.f32.mrb[7].mxu1 }
  0xf9   :  { %241 = vst [vmem:[#allocation5 + $0x28] sm:$0xff] %v225_v57  ;;  %249 = vst [vmem:[#allocation5 + $0x68] sm:$0xff] %v233_v58  ;;  %v211_v5 = vmul.f32 0.25, %v161_v2  ;;  %v219_v6 = vmul.f32 0.25, %v185_v3 }
  0xfa   :  { %v226_v7 = vadd.f32 %v210_v0, %v194_v60  ;;  %v234_v8 = vadd.f32 %v218_v1, %v202_v62 }
  0xfb   :  { %v227_v9 = vadd.f32 %v211_v5, %v195_v63  ;;  %v235_v10 = vadd.f32 %v219_v6, %v203_v4 }
  0xfc   :  { %242 = vst [vmem:[#allocation5 + $0x30] sm:$0xff] %v226_v7  ;;  %250 = vst [vmem:[#allocation5 + $0x70] sm:$0xff] %v234_v8 }
  0xfd   :  { %243 = vst [vmem:[#allocation5 + $0x38] sm:$0xff] %v227_v9  ;;  %251 = vst [vmem:[#allocation5 + $0x78] sm:$0xff] %v235_v10 }
  0xfe   :  { %322 = shalt.err (!%p319_p12)
}
  0xff   :  { %s323_s19 = scalar_lea.hbm %s430_s3, 2048 }
 0x100   :  { %p324_p13 = scmp.ne.s32.totalorder %s430_s3, %s323_s19  ;;  %p327_p0 = scmp.lt.u32.totalorder %s323_s19, %s430_s3 }
 0x102   :  { %p329_p1 = pnand %p327_p0, %p324_p13 }
 0x104   :  { %332 = shalt.err (!%p329_p1)
}
 0x105   :  { %263 = dma.vmem_to_hbm [thread:$0]  %s258_s15, 2048, %s430_s3, [#allocation4], %s338_s22, %s338_s22, %s339_s23  }
 0x106   :  { %335 = dma.done.wait [#allocation4], 2048  }
 0x107   :  { %336 = vsyncadd [#allocation4], 4294965248 }
 0x108   :  { %267 = vsyncpa [#allocation3], 1 }
 0x109   :  { %268 = vsyncpa [#allocation4], 1 }

</bundles_post_ra>
